<compile_context>
chip_gen: v5e
topology: v5e:2x2
jax: 0.10.0
libtpu: 0.0.40
codegen_flags: <defaults>
</compile_context>

<pallas_src>
import functools

import jax
import jax.numpy as jnp
from jax.experimental import pallas as pl
from jax.experimental.pallas import tpu as pltpu


# ---------------------------------------------------------------------------
# Config (small, deterministic, consistent with the module's __init__)
# ---------------------------------------------------------------------------
BATCH = 2
CONTEXT_LEN = 8      # C (sequence length == context_len here)
N_EMBED = 32         # N
HEAD_SIZE = 16
NUM_HEADS = 4


# ---------------------------------------------------------------------------
# Fused kernel: whole problem in one grid step.
#   qkv    = x_flat @ [Wq_stacked*(1/HS) | Wk | Wv]      (one MXU push, all batches)
#   per batch b (unrolled, static sublane-aligned slices):
#     q_stk = heads stacked along sublanes -> (H*C, HS)
#     s     = q_stk @ k_b^T + causal additive mask       (one matmul, all heads)
#     attn  = softmax(s)  (reciprocal on EUP)
#     av    = attn @ v_b                                  (one matmul, all heads)
#     y_b   = concat_heads(av) @ Wp_pad + bp_pad          (one matmul, 128 lanes)
#   o_ref[b] = y_b   (full-lane, unmasked store)
# ---------------------------------------------------------------------------
def _mqa_fused_kernel(x_ref, wqkv_ref, wp_ref, bp_ref, o_ref,
                      *, batch, ctx, num_heads, head_size):
    B, C, H, HS = batch, ctx, num_heads, head_size

    # One fused projection matmul for Q (all heads), K and V, for all batches.
    qkv = jnp.dot(x_ref[...], wqkv_ref[...],
                  preferred_element_type=jnp.float32)            # (B*C, H*HS + 2*HS)
    q_all = qkv[:, : H * HS]                                     # (B*C, H*HS)
    k_all = qkv[:, H * HS: H * HS + HS]                          # (B*C, HS)
    v_all = qkv[:, H * HS + HS:]                                 # (B*C, HS)

    # Additive causal mask tiled over heads, hoisted once: (H*C, C).
    # Diagonal is never masked, so -1e30 rows always have a finite max (no NaN risk).
    row = jax.lax.broadcasted_iota(jnp.int32, (H * C, C), 0) % C
    col = jax.lax.broadcasted_iota(jnp.int32, (H * C, C), 1)
    add_mask = jnp.where(col <= row, 0.0, -1e30).astype(jnp.float32)

    wp = wp_ref[...]                                             # (H*HS, NPAD)
    bp = bp_ref[...]                                             # (1, NPAD)

    for b in range(B):                                           # unrolled, B=2
        r0 = b * C                                               # sublane-aligned (C=8, f32)
        q_b = q_all[r0:r0 + C, :]                                # (C, H*HS)
        k_b = k_all[r0:r0 + C, :]                                # (C, HS)
        v_b = v_all[r0:r0 + C, :]                                # (C, HS)

        # Stack heads along sublanes: (H*C, HS). One score matmul for all heads,
        # contracting the last dims (no k.T materialization).
        q_stk = jnp.concatenate([q_b[:, h * HS:(h + 1) * HS] for h in range(H)], axis=0)
        s = jax.lax.dot_general(q_stk, k_b, (((1,), (1,)), ((), ())),
                                preferred_element_type=jnp.float32)   # (H*C, C)
        s = s + add_mask

        m = jnp.max(s, axis=-1, keepdims=True)
        p = jnp.exp(s - m)
        denom = jnp.sum(p, axis=-1, keepdims=True)
        attn = p * pl.reciprocal(denom, approx=False)            # reciprocal on EUP, no divide
        # attn_drop is identity in eval mode.

        av = jnp.dot(attn, v_b, preferred_element_type=jnp.float32)   # (H*C, HS), all heads

        # Head "concat" back to (C, H*HS), then one lane-dense output projection.
        cat = jnp.concatenate([av[h * C:(h + 1) * C, :] for h in range(H)], axis=1)
        y_b = jnp.dot(cat, wp, preferred_element_type=jnp.float32) + bp    # (C, NPAD)

        o_ref[b] = y_b.astype(o_ref.dtype)                       # full 128-lane store


# ---------------------------------------------------------------------------
# Wrapper
# ---------------------------------------------------------------------------
@jax.jit
def multi_query_attention(x, wq_all, wk, wv, wp, bp):
    """x: (B, C, N); wq_all: (H, N, HS); wk, wv: (N, HS); wp: (H*HS, N); bp: (1, N).

    Weights are pre-transposed to (in_features, out_features) so the kernel computes
    y = x @ W (nn.Linear stores W as (out, in)).
    """
    B, C, N = x.shape
    H, _, HS = wq_all.shape
    npad = ((N + 127) // 128) * 128          # lane-dense output width (>= 128)

    # One-time weight transforms (outside the kernel, folded by XLA):
    #  * stack per-head Q weights to (N, H*HS), fold the 1/head_size score scale (exact in f32),
    #  * fuse Q/K/V weights into a single (N, H*HS + 2*HS) matrix,
    #  * zero-pad the output projection to 128 lanes for unmasked stores.
    wq_stacked = jnp.transpose(wq_all, (1, 0, 2)).reshape(N, H * HS) * (1.0 / HS)
    wqkv = jnp.concatenate([wq_stacked, wk, wv], axis=1)          # (N, H*HS + 2*HS)
    wp_pad = jnp.pad(wp, ((0, 0), (0, npad - N)))                 # (H*HS, npad)
    bp_pad = jnp.pad(bp, ((0, 0), (0, npad - N)))                 # (1, npad)
    x_flat = x.reshape(B * C, N)                                  # batch folded into rows

    kernel = functools.partial(_mqa_fused_kernel, batch=B, ctx=C,
                               num_heads=H, head_size=HS)
    out_pad = pl.pallas_call(
        kernel,
        out_shape=jax.ShapeDtypeStruct((B, C, npad), x.dtype),
        grid_spec=pltpu.PrefetchScalarGridSpec(
            num_scalar_prefetch=0,
            grid=(1,),                                            # collapsed grid: one step
            in_specs=[
                pl.BlockSpec((B * C, N), lambda i: (0, 0)),       # x (all batches)
                pl.BlockSpec((N, H * HS + 2 * HS), lambda i: (0, 0)),   # fused QKV weights
                pl.BlockSpec((H * HS, npad), lambda i: (0, 0)),   # Wp (lane-padded)
                pl.BlockSpec((1, npad), lambda i: (0, 0)),        # bp (lane-padded)
            ],
            out_specs=pl.BlockSpec((B, C, npad), lambda i: (0, 0, 0)),
        ),
        compiler_params=pltpu.CompilerParams(
            dimension_semantics=("arbitrary",)),
    )(x_flat, wqkv, wp_pad, bp_pad)
    return out_pad[:, :, :N]


# Pure-JAX reference (mirrors the PyTorch forward exactly) for a sanity check.
def multi_query_attention_ref(x, wq_all, wk, wv, wp, bp):
    B, C, N = x.shape
    H, _, HS = wq_all.shape
    k = x @ wk                                                # (B, C, HS)
    v = x @ wv
    outs = []
    tril = jnp.tril(jnp.ones((C, C), dtype=bool))
    for h in range(H):
        q = x @ wq_all[h]
        s = jnp.einsum("bcd,bed->bce", q, k) / HS
        s = jnp.where(tril, s, -jnp.inf)
        a = jax.nn.softmax(s, axis=-1)
        outs.append(jnp.einsum("bce,bed->bcd", a, v))
    cat = jnp.concatenate(outs, axis=-1)
    return cat @ wp + bp[0]


if __name__ == "__main__":
    key = jax.random.PRNGKey(0)
    kx, kq, kk, kv, kp, kb = jax.random.split(key, 6)

    # Deterministic synthetic parameters (shapes from the module's __init__).
    x = jax.random.normal(kx, (BATCH, CONTEXT_LEN, N_EMBED), dtype=jnp.float32)
    wq_all = 0.1 * jax.random.normal(kq, (NUM_HEADS, N_EMBED, HEAD_SIZE), dtype=jnp.float32)
    wk = 0.1 * jax.random.normal(kk, (N_EMBED, HEAD_SIZE), dtype=jnp.float32)
    wv = 0.1 * jax.random.normal(kv, (N_EMBED, HEAD_SIZE), dtype=jnp.float32)
    wp = 0.1 * jax.random.normal(kp, (NUM_HEADS * HEAD_SIZE, N_EMBED), dtype=jnp.float32)
    bp = 0.1 * jax.random.normal(kb, (1, N_EMBED), dtype=jnp.float32)

    out = multi_query_attention(x, wq_all, wk, wv, wp, bp)
    out = jax.block_until_ready(out)

    ref = multi_query_attention_ref(x, wq_all, wk, wv, wp, bp)
    assert out.shape == (BATCH, CONTEXT_LEN, N_EMBED)
    assert jnp.allclose(out, ref, atol=1e-4, rtol=1e-4), "mismatch vs reference"

    print("KERNEL_OK")
</pallas_src>

<mosaic_0001>
module attributes {stable_mosaic.version = 11 : i64} {
  func.func @_mqa_fused_kernel(%arg0: i32, %arg1: memref<16x32xf32, #tpu.memory_space<vmem>>, %arg2: memref<32x96xf32, #tpu.memory_space<vmem>>, %arg3: memref<64x128xf32, #tpu.memory_space<vmem>>, %arg4: memref<1x128xf32, #tpu.memory_space<vmem>>, %arg5: memref<2x8x128xf32, #tpu.memory_space<vmem>>) attributes {dimension_semantics = [#tpu.dimension_semantics<arbitrary>], iteration_bounds = array<i64: 1>, scalar_prefetch = 0 : i64, scratch_operands = 0 : i64, tpu.core_type = #tpu.core_type<tc>, window_params = [{pipeline_mode = #tpu.pipeline_mode<synchronous>, transform_indices = @transform_0, window_bounds = array<i64: 16, 32>}, {pipeline_mode = #tpu.pipeline_mode<synchronous>, transform_indices = @transform_1, window_bounds = array<i64: 32, 96>}, {pipeline_mode = #tpu.pipeline_mode<synchronous>, transform_indices = @transform_2, window_bounds = array<i64: 64, 128>}, {pipeline_mode = #tpu.pipeline_mode<synchronous>, transform_indices = @transform_3, window_bounds = array<i64: 1, 128>}, {pipeline_mode = #tpu.pipeline_mode<synchronous>, transform_indices = @transform_4, window_bounds = array<i64: 2, 8, 128>}]} {
    %c0 = arith.constant 0 : index
    %c0_0 = arith.constant 0 : index
    %0 = vector.load %arg1[%c0, %c0_0] : memref<16x32xf32, #tpu.memory_space<vmem>>, vector<16x32xf32>
    %c0_1 = arith.constant 0 : index
    %c0_2 = arith.constant 0 : index
    %1 = vector.load %arg2[%c0_1, %c0_2] : memref<32x96xf32, #tpu.memory_space<vmem>>, vector<32x96xf32>
    %cst = arith.constant dense<0.000000e+00> : vector<16x96xf32>
    %2 = tpu.matmul %0, %1, %cst {dimension_numbers = #tpu.dot_dimension_numbers<[1], [0], [0], [1], [0, 0, 1, 1], [], []>} : vector<16x32xf32>, vector<32x96xf32>, vector<16x96xf32> -> vector<16x96xf32>
    %3 = vector.extract_strided_slice %2 {offsets = [0, 0], sizes = [16, 64], strides = [1, 1]} : vector<16x96xf32> to vector<16x64xf32>
    %4 = vector.extract_strided_slice %2 {offsets = [0, 64], sizes = [16, 16], strides = [1, 1]} : vector<16x96xf32> to vector<16x16xf32>
    %5 = vector.extract_strided_slice %2 {offsets = [0, 80], sizes = [16, 16], strides = [1, 1]} : vector<16x96xf32> to vector<16x16xf32>
    %6 = tpu.iota {dimensions = array<i32: 0>} : vector<32x8xi32>
    %c8_i32 = arith.constant 8 : i32
    %c0_i32 = arith.constant 0 : i32
    %7 = arith.cmpi eq, %c8_i32, %c0_i32 : i32
    %c1_i32 = arith.constant 1 : i32
    %8 = arith.select %7, %c1_i32, %c8_i32 : i32
    %9 = vector.broadcast %8 : i32 to vector<32x8xi32>
    %10 = arith.remsi %6, %9 : vector<32x8xi32>
    %c0_i32_3 = arith.constant 0 : i32
    %11 = vector.broadcast %c0_i32_3 : i32 to vector<32x8xi32>
    %12 = arith.cmpi ne, %10, %11 : vector<32x8xi32>
    %c0_i32_4 = arith.constant 0 : i32
    %13 = vector.broadcast %c0_i32_4 : i32 to vector<32x8xi32>
    %14 = arith.cmpi slt, %10, %13 : vector<32x8xi32>
    %c0_i32_5 = arith.constant 0 : i32
    %15 = arith.cmpi slt, %8, %c0_i32_5 : i32
    %16 = vector.broadcast %15 : i1 to vector<32x8xi1>
    %17 = vector.broadcast %16 : vector<32x8xi1> to vector<32x8xi1>
    %18 = arith.xori %14, %17 : vector<32x8xi1>
    %19 = arith.andi %18, %12 : vector<32x8xi1>
    %20 = vector.broadcast %8 : i32 to vector<32x8xi32>
    %21 = arith.addi %10, %20 : vector<32x8xi32>
    %22 = arith.select %19, %21, %10 : vector<32x8xi1>, vector<32x8xi32>
    %23 = tpu.iota {dimensions = array<i32: 1>} : vector<32x8xi32>
    %24 = arith.cmpi sle, %23, %22 : vector<32x8xi32>
    %cst_6 = arith.constant 0.000000e+00 : f32
    %cst_7 = arith.constant -1.000000e+30 : f32
    %25 = vector.broadcast %cst_6 : f32 to vector<32x8xf32>
    %26 = vector.broadcast %cst_7 : f32 to vector<32x8xf32>
    %27 = arith.select %24, %25, %26 : vector<32x8xi1>, vector<32x8xf32>
    %c0_8 = arith.constant 0 : index
    %c0_9 = arith.constant 0 : index
    %28 = vector.load %arg3[%c0_8, %c0_9] : memref<64x128xf32, #tpu.memory_space<vmem>>, vector<64x128xf32>
    %c0_10 = arith.constant 0 : index
    %c0_11 = arith.constant 0 : index
    %29 = vector.load %arg4[%c0_10, %c0_11] : memref<1x128xf32, #tpu.memory_space<vmem>>, vector<1x128xf32>
    %30 = vector.extract_strided_slice %3 {offsets = [0, 0], sizes = [8, 64], strides = [1, 1]} : vector<16x64xf32> to vector<8x64xf32>
    %31 = vector.extract_strided_slice %4 {offsets = [0, 0], sizes = [8, 16], strides = [1, 1]} : vector<16x16xf32> to vector<8x16xf32>
    %32 = vector.extract_strided_slice %5 {offsets = [0, 0], sizes = [8, 16], strides = [1, 1]} : vector<16x16xf32> to vector<8x16xf32>
    %33 = vector.extract_strided_slice %30 {offsets = [0, 0], sizes = [8, 16], strides = [1, 1]} : vector<8x64xf32> to vector<8x16xf32>
    %34 = vector.extract_strided_slice %30 {offsets = [0, 16], sizes = [8, 16], strides = [1, 1]} : vector<8x64xf32> to vector<8x16xf32>
    %35 = vector.extract_strided_slice %30 {offsets = [0, 32], sizes = [8, 16], strides = [1, 1]} : vector<8x64xf32> to vector<8x16xf32>
    %36 = vector.extract_strided_slice %30 {offsets = [0, 48], sizes = [8, 16], strides = [1, 1]} : vector<8x64xf32> to vector<8x16xf32>
    %37 = tpu.concatenate %33, %34, %35, %36 in 0 : vector<8x16xf32>, vector<8x16xf32>, vector<8x16xf32>, vector<8x16xf32> -> vector<32x16xf32>
    %cst_12 = arith.constant dense<0.000000e+00> : vector<32x8xf32>
    %38 = tpu.matmul %37, %31, %cst_12 {dimension_numbers = #tpu.dot_dimension_numbers<[1], [1], [0], [0], [0, 0, 1, 0], [], []>} : vector<32x16xf32>, vector<8x16xf32>, vector<32x8xf32> -> vector<32x8xf32>
    %39 = arith.addf %38, %27 : vector<32x8xf32>
    %cst_13 = arith.constant dense<0xFF800000> : vector<32xf32>
    %40 = vector.multi_reduction <maximumf>, %39, %cst_13 [1] : vector<32x8xf32> to vector<32xf32>
    %41 = vector.shape_cast %40 : vector<32xf32> to vector<32x1xf32>
    %42 = vector.broadcast %41 : vector<32x1xf32> to vector<32x8xf32>
    %43 = arith.subf %39, %42 : vector<32x8xf32>
    %44 = math.exp %43 : vector<32x8xf32>
    %cst_14 = arith.constant dense<0.000000e+00> : vector<32xf32>
    %45 = vector.multi_reduction <add>, %44, %cst_14 [1] : vector<32x8xf32> to vector<32xf32>
    %46 = vector.shape_cast %45 : vector<32xf32> to vector<32x1xf32>
    %47 = tpu.reciprocal %46 : vector<32x1xf32> -> vector<32x1xf32>
    %48 = vector.broadcast %47 : vector<32x1xf32> to vector<32x8xf32>
    %49 = arith.mulf %44, %48 : vector<32x8xf32>
    %cst_15 = arith.constant dense<0.000000e+00> : vector<32x16xf32>
    %50 = tpu.matmul %49, %32, %cst_15 {dimension_numbers = #tpu.dot_dimension_numbers<[1], [0], [0], [1], [0, 0, 1, 1], [], []>} : vector<32x8xf32>, vector<8x16xf32>, vector<32x16xf32> -> vector<32x16xf32>
    %51 = vector.extract_strided_slice %50 {offsets = [0, 0], sizes = [8, 16], strides = [1, 1]} : vector<32x16xf32> to vector<8x16xf32>
    %52 = vector.extract_strided_slice %50 {offsets = [8, 0], sizes = [8, 16], strides = [1, 1]} : vector<32x16xf32> to vector<8x16xf32>
    %53 = vector.extract_strided_slice %50 {offsets = [16, 0], sizes = [8, 16], strides = [1, 1]} : vector<32x16xf32> to vector<8x16xf32>
    %54 = vector.extract_strided_slice %50 {offsets = [24, 0], sizes = [8, 16], strides = [1, 1]} : vector<32x16xf32> to vector<8x16xf32>
    %55 = tpu.concatenate %51, %52, %53, %54 in 1 : vector<8x16xf32>, vector<8x16xf32>, vector<8x16xf32>, vector<8x16xf32> -> vector<8x64xf32>
    %cst_16 = arith.constant dense<0.000000e+00> : vector<8x128xf32>
    %56 = tpu.matmul %55, %28, %cst_16 {dimension_numbers = #tpu.dot_dimension_numbers<[1], [0], [0], [1], [0, 0, 1, 1], [], []>} : vector<8x64xf32>, vector<64x128xf32>, vector<8x128xf32> -> vector<8x128xf32>
    %57 = vector.broadcast %29 : vector<1x128xf32> to vector<8x128xf32>
    %58 = arith.addf %56, %57 : vector<8x128xf32>
    %c0_17 = arith.constant 0 : index
    %c0_18 = arith.constant 0 : index
    %c0_19 = arith.constant 0 : index
    %59 = vector.load %arg5[%c0_17, %c0_18, %c0_19] : memref<2x8x128xf32, #tpu.memory_space<vmem>>, vector<1x8x128xf32>
    %60 = vector.shape_cast %59 : vector<1x8x128xf32> to vector<8x128xf32>
    %61 = vector.shape_cast %58 : vector<8x128xf32> to vector<1x8x128xf32>
    tpu.vector_store %arg5[%c0_17, %c0_18, %c0_19], %61 {strides = array<i32>} : memref<2x8x128xf32, #tpu.memory_space<vmem>>, vector<1x8x128xf32>,
    %62 = vector.extract_strided_slice %3 {offsets = [8, 0], sizes = [8, 64], strides = [1, 1]} : vector<16x64xf32> to vector<8x64xf32>
    %63 = vector.extract_strided_slice %4 {offsets = [8, 0], sizes = [8, 16], strides = [1, 1]} : vector<16x16xf32> to vector<8x16xf32>
    %64 = vector.extract_strided_slice %5 {offsets = [8, 0], sizes = [8, 16], strides = [1, 1]} : vector<16x16xf32> to vector<8x16xf32>
    %65 = vector.extract_strided_slice %62 {offsets = [0, 0], sizes = [8, 16], strides = [1, 1]} : vector<8x64xf32> to vector<8x16xf32>
    %66 = vector.extract_strided_slice %62 {offsets = [0, 16], sizes = [8, 16], strides = [1, 1]} : vector<8x64xf32> to vector<8x16xf32>
    %67 = vector.extract_strided_slice %62 {offsets = [0, 32], sizes = [8, 16], strides = [1, 1]} : vector<8x64xf32> to vector<8x16xf32>
    %68 = vector.extract_strided_slice %62 {offsets = [0, 48], sizes = [8, 16], strides = [1, 1]} : vector<8x64xf32> to vector<8x16xf32>
    %69 = tpu.concatenate %65, %66, %67, %68 in 0 : vector<8x16xf32>, vector<8x16xf32>, vector<8x16xf32>, vector<8x16xf32> -> vector<32x16xf32>
    %cst_20 = arith.constant dense<0.000000e+00> : vector<32x8xf32>
    %70 = tpu.matmul %69, %63, %cst_20 {dimension_numbers = #tpu.dot_dimension_numbers<[1], [1], [0], [0], [0, 0, 1, 0], [], []>} : vector<32x16xf32>, vector<8x16xf32>, vector<32x8xf32> -> vector<32x8xf32>
    %71 = arith.addf %70, %27 : vector<32x8xf32>
    %cst_21 = arith.constant dense<0xFF800000> : vector<32xf32>
    %72 = vector.multi_reduction <maximumf>, %71, %cst_21 [1] : vector<32x8xf32> to vector<32xf32>
    %73 = vector.shape_cast %72 : vector<32xf32> to vector<32x1xf32>
    %74 = vector.broadcast %73 : vector<32x1xf32> to vector<32x8xf32>
    %75 = arith.subf %71, %74 : vector<32x8xf32>
    %76 = math.exp %75 : vector<32x8xf32>
    %cst_22 = arith.constant dense<0.000000e+00> : vector<32xf32>
    %77 = vector.multi_reduction <add>, %76, %cst_22 [1] : vector<32x8xf32> to vector<32xf32>
    %78 = vector.shape_cast %77 : vector<32xf32> to vector<32x1xf32>
    %79 = tpu.reciprocal %78 : vector<32x1xf32> -> vector<32x1xf32>
    %80 = vector.broadcast %79 : vector<32x1xf32> to vector<32x8xf32>
    %81 = arith.mulf %76, %80 : vector<32x8xf32>
    %cst_23 = arith.constant dense<0.000000e+00> : vector<32x16xf32>
    %82 = tpu.matmul %81, %64, %cst_23 {dimension_numbers = #tpu.dot_dimension_numbers<[1], [0], [0], [1], [0, 0, 1, 1], [], []>} : vector<32x8xf32>, vector<8x16xf32>, vector<32x16xf32> -> vector<32x16xf32>
    %83 = vector.extract_strided_slice %82 {offsets = [0, 0], sizes = [8, 16], strides = [1, 1]} : vector<32x16xf32> to vector<8x16xf32>
    %84 = vector.extract_strided_slice %82 {offsets = [8, 0], sizes = [8, 16], strides = [1, 1]} : vector<32x16xf32> to vector<8x16xf32>
    %85 = vector.extract_strided_slice %82 {offsets = [16, 0], sizes = [8, 16], strides = [1, 1]} : vector<32x16xf32> to vector<8x16xf32>
    %86 = vector.extract_strided_slice %82 {offsets = [24, 0], sizes = [8, 16], strides = [1, 1]} : vector<32x16xf32> to vector<8x16xf32>
    %87 = tpu.concatenate %83, %84, %85, %86 in 1 : vector<8x16xf32>, vector<8x16xf32>, vector<8x16xf32>, vector<8x16xf32> -> vector<8x64xf32>
    %cst_24 = arith.constant dense<0.000000e+00> : vector<8x128xf32>
    %88 = tpu.matmul %87, %28, %cst_24 {dimension_numbers = #tpu.dot_dimension_numbers<[1], [0], [0], [1], [0, 0, 1, 1], [], []>} : vector<8x64xf32>, vector<64x128xf32>, vector<8x128xf32> -> vector<8x128xf32>
    %89 = vector.broadcast %29 : vector<1x128xf32> to vector<8x128xf32>
    %90 = arith.addf %88, %89 : vector<8x128xf32>
    %c1 = arith.constant 1 : index
    %c0_25 = arith.constant 0 : index
    %c0_26 = arith.constant 0 : index
    %91 = vector.load %arg5[%c1, %c0_25, %c0_26] : memref<2x8x128xf32, #tpu.memory_space<vmem>>, vector<1x8x128xf32>
    %92 = vector.shape_cast %91 : vector<1x8x128xf32> to vector<8x128xf32>
    %93 = vector.shape_cast %90 : vector<8x128xf32> to vector<1x8x128xf32>
    tpu.vector_store %arg5[%c1, %c0_25, %c0_26], %93 {strides = array<i32>} : memref<2x8x128xf32, #tpu.memory_space<vmem>>, vector<1x8x128xf32>,
    return
  }
  func.func @transform_0(%arg0: i32) -> (i32, i32) {
    %c0_i32 = arith.constant 0 : i32
    %c0_i32_0 = arith.constant 0 : i32
    %c0_i32_1 = arith.constant 0 : i32
    return %c0_i32, %c0_i32_0 : i32, i32
  }
  func.func @transform_1(%arg0: i32) -> (i32, i32) {
    %c0_i32 = arith.constant 0 : i32
    %c0_i32_0 = arith.constant 0 : i32
    %c0_i32_1 = arith.constant 0 : i32
    return %c0_i32, %c0_i32_0 : i32, i32
  }
  func.func @transform_2(%arg0: i32) -> (i32, i32) {
    %c0_i32 = arith.constant 0 : i32
    %c0_i32_0 = arith.constant 0 : i32
    %c0_i32_1 = arith.constant 0 : i32
    return %c0_i32, %c0_i32_0 : i32, i32
  }
  func.func @transform_3(%arg0: i32) -> (i32, i32) {
    %c0_i32 = arith.constant 0 : i32
    %c0_i32_0 = arith.constant 0 : i32
    %c0_i32_1 = arith.constant 0 : i32
    return %c0_i32, %c0_i32_0 : i32, i32
  }
  func.func @transform_4(%arg0: i32) -> (i32, i32, i32) {
    %c0_i32 = arith.constant 0 : i32
    %c0_i32_0 = arith.constant 0 : i32
    %c0_i32_1 = arith.constant 0 : i32
    %c0_i32_2 = arith.constant 0 : i32
    return %c0_i32, %c0_i32_0, %c0_i32_1 : i32, i32, i32
  }
}

</mosaic_0001>

<bundles_post_ra>
// kernel: multi_query_attention.1
= control target key start
LH: loop header
LB: loop body
LE: loop exit
PB: predicated region body
PF: predicated region fallthrough
CT: control target
= control target key end

     0   :  { %s915_s0 = inlined_call_operand.vmem [shape: f32[16,32], index: 0, kind: input, shape index: {}]   ;;  %s916_s1 = inlined_call_operand.vmem [shape: f32[32,96], index: 1, kind: input, shape index: {}]   ;;  %s917_s2 = inlined_call_operand.vmem [shape: f32[64,128], index: 2, kind: input, shape index: {}]   ;;  %s918_s3 = inlined_call_operand.vmem [shape: f32[1,128], index: 3, kind: input, shape index: {}]   ;;  %s919_s4 = inlined_call_operand.hbm [shape: f32[2,8,128], index: 4, kind: output, shape index: {}]  }
   0x1   :  { %v23_v0 = vld [vmem:[%s916_s1 + $0x18] sm:$0xff]  ;;  %v22_v1 = vld [vmem:[%s916_s1 + $0x10] sm:$0xff]  ;;  %v21_v2 = vld [vmem:[%s916_s1 + $0x8] sm:$0xff] }
   0x2   :  { %43 = vmatpush.msra.mxu0 %v23_v0  ;;  %628 = vmatpush.msra.mxu1 %v23_v0 }
   0x3   :  { %9 = vsyncpa [#allocation3], 0  ;;  %v20_v3 = vld [vmem:[%s916_s1] sm:$0xff]  ;;  %vm24_vm0 = vcmask 261120   ;;  %v19_v5 = vld [vmem:[%s915_s0 + $0x8] sm:$0xff]  ;;  %s702_s1 = smov 96   ;;  %v54_v13 = vlaneseq }
   0x4   :  { %44 = vmatpush.msra.mxu0 %v22_v1  ;;  %629 = vmatpush.msra.mxu1 %v22_v1  ;;  %v18_v4 = vld [vmem:[%s915_s0] sm:$0xff]  ;;  %s703_s27 = smov 64   ;;  %s704_s28 = smov 80   ;;  %vm135_vm1 = vcmask 130048   ;;  %v706_v18 = vmov -1e+30  }
   0x5   :  { %s705_s0 = smov 112   ;;  %v55_v14 = vshrl.u32 %v54_v13, 7  ;;  %v108_v16 = vand.u32 127, %v54_v13  ;;  %vm175_vm3 = vcmask 64512   ;;  %s707_s29 = smov 48  }
   0x6   :  { %45 = vmatpush.msra.mxu0 %v21_v2  ;;  %630 = vmatpush.msra.mxu1 %v21_v2  ;;  %s708_s30 = smov 16   ;;  %s709_s5 = smov 32  }
   0x7   :  { %v63_v15 = vand.u32 7, %v55_v14  ;;  %v56_v17 = vadd.s32 8, %v55_v14  ;;  %v57_v24 = vadd.s32 16, %v55_v14  ;;  %v58_v30 = vadd.s32 24, %v55_v14  ;;  %s594_s26 = sshll.u32 %s919_s4, 4  ;;  %s595_s26 = int_to_ptr.hbm [resolvable:$true] %s594_s26 }
   0x8   :  { %46 = vmatpush.msra.mxu0 %v20_v3  ;;  %631 = vmatpush.msra.mxu1 %v20_v3 }
   0x9   :  { %606 = vmatmul.msk.f32.vlgmr.msra.gmra.mxu0 %vm24_vm0, %v18_v4  ;;  %607 = vmatmul.msk.f32.vlgmr.msra.gmra.mxu1 %vm24_vm0, %v19_v5  ;;  %vm109_vm2 = vcmp.le.s32.totalorder %v108_v16, %v63_v15  ;;  %v70_v20 = vand.u32 7, %v56_v17  ;;  %v77_v26 = vand.u32 7, %v57_v24  ;;  %v84_v32 = vand.u32 7, %v58_v30 }
   0xa   :  { %v113_v19 = vsel %vm109_vm2, 0.0, %v706_v18 }
   0xb   :  { %vm110_vm4 = vcmp.le.s32.totalorder %v108_v16, %v70_v20  ;;  %vm111_vm5 = vcmp.le.s32.totalorder %v108_v16, %v77_v26  ;;  %vm112_vm6 = vcmp.le.s32.totalorder %v108_v16, %v84_v32 }
   0xc   :  { %v780_v25 = vsel %vm110_vm4, 0.0, %v706_v18  ;;  %v784_v31 = vsel %vm111_vm5, 0.0, %v706_v18  ;;  %v788_v36 = vsel %vm112_vm6, 0.0, %v706_v18 }
  0x86   :  { %v758_v6 = vpop.f32.mrf.mxu0  ;;  %v767_v7 = vpop.f32.mrf.mxu1 }
  0x87   :  { %129 = vrot.lane.b32.xlu1 %v758_v6, %s702_s1  ;;  %133 = vrot.lane.b32.xlu0 %v758_v6, %s703_s27 }
  0x88   :  { %367 = vrot.lane.b32.xlu2 %v767_v7, %s703_s27  ;;  %s712_s27 = smov 8  }
  0x8f   :  { %131 = vrot.lane.b32.xlu1 %v758_v6, %s704_s28  ;;  %127 = vrot.lane.b32.xlu0 %v758_v6, %s705_s0 }
  0xe2   :  { %v368_v12 = vpop.permute.xlu2 %367 }
  0xe3   :  { %618 = vmatpush.xpose.msk.msrb.mxu0 %vm135_vm1, %v368_v12 }
  0xe6   :  { %619 = vmatmul.msk.f32.vlgmr.msrb.gmra.mxu0 %vm135_vm1, %v767_v7 }
  0xf9   :  { %v134_v8 = vpop.permute.xlu0 %133  ;;  %v130_v10 = vpop.permute.xlu1 %129 }
  0xfa   :  { %608 = vmatpush.xpose.msk.msrb.mxu1 %vm135_vm1, %v134_v8 }
  0xfd   :  { %609 = vmatmul.msk.f32.vlgmr.msrb.gmra.mxu1 %vm135_vm1, %v758_v6 }
 0x101   :  { %v128_v9 = vpop.permute.xlu0 %127  ;;  %v132_v11 = vpop.permute.xlu1 %131 }
 0x105   :  { %610 = vmatmul.msk.f32.gmra.mxu1 %vm135_vm1, %v128_v9 }
 0x10d   :  { %611 = vmatmul.msk.f32.gmra.mxu1 %vm135_vm1, %v130_v10 }
 0x115   :  { %612 = vmatmul.msk.f32.gmra.mxu1 %vm135_vm1, %v132_v11 }
 0x163   :  { %v396_v58 = vpop.f32.mrf.mxu0 }
 0x164   :  { %v814_v60 = vadd.f32 %v396_v58, %v113_v19 }
 0x166   :  { %v408_v62 = vsel %vm175_vm3, %v814_v60, -inf }
 0x17a   :  { %v163_v21 = vpop.f32.mrf.mxu1 }
 0x17b   :  { %v164_v22 = vadd.f32 %v163_v21, %v113_v19 }
 0x17d   :  { %v176_v23 = vsel %vm175_vm3, %v164_v22, -inf }
 0x17e   :  { %177 = vmax.xlane.f32.xlu2 %v176_v23 }
 0x182   :  { %v166_v27 = vpop.f32.mrf.mxu1 }
 0x183   :  { %v167_v28 = vadd.f32 %v166_v27, %v780_v25 }
 0x185   :  { %v179_v29 = vsel %vm175_vm3, %v167_v28, -inf }
 0x186   :  { %180 = vmax.xlane.f32.xlu2 %v179_v29 }
 0x18a   :  { %v169_v33 = vpop.f32.mrf.mxu1 }
 0x18b   :  { %v170_v34 = vadd.f32 %v169_v33, %v784_v31 }
 0x18d   :  { %v182_v35 = vsel %vm175_vm3, %v170_v34, -inf }
 0x18e   :  { %183 = vmax.xlane.f32.xlu0 %v182_v35 }
 0x192   :  { %v172_v37 = vpop.f32.mrf.mxu1 }
 0x193   :  { %v173_v38 = vadd.f32 %v172_v37, %v788_v36 }
 0x195   :  { %v185_v39 = vsel %vm175_vm3, %v173_v38, -inf }
 0x196   :  { %186 = vmax.xlane.f32.xlu1 %v185_v39 }
 0x19e   :  { %361 = vrot.lane.b32.xlu2 %v767_v7, %s705_s0 }
 0x1a2   :  { %363 = vrot.lane.b32.xlu0 %v767_v7, %s702_s1  ;;  %s711_s1 = smov 128  }
 0x1f1   :  { %v178_v40 = vpop.xlane.xlu2 %177 }
 0x1f2   :  { %v188_v41 = vsub.f32 %v164_v22, %v178_v40 }
 0x1f4   :  { %v192_v42 = vmul.f32 1.442695, %v188_v41 }
 0x1f6   :  { %644 = vpow2.f32 %v192_v42 }
 0x1f9   :  { %v181_v43 = vpop.xlane.xlu2 %180 }
 0x1fa   :  { %v189_v44 = vsub.f32 %v167_v28, %v181_v43 }
 0x1fc   :  { %v796_v45 = vpop.eup %644  ;;  %v194_v46 = vmul.f32 1.442695, %v189_v44 }
 0x1fd   :  { %v200_v47 = vsel %vm175_vm3, %v796_v45, 0.0 }
 0x1fe   :  { %646 = vpow2.f32 %v194_v46  ;;  %201 = vadd.xlane.f32.xlu2 %v200_v47 }
 0x201   :  { %v184_v48 = vpop.xlane.xlu0 %183  ;;  %v362_v49 = vpop.permute.xlu2 %361 }
 0x202   :  { %v190_v50 = vsub.f32 %v170_v34, %v184_v48  ;;  %620 = vmatmul.msk.f32.gmra.mxu0 %vm135_vm1, %v362_v49 }
 0x204   :  { %v801_v51 = vpop.eup %646  ;;  %v196_v52 = vmul.f32 1.442695, %v190_v50 }
 0x205   :  { %v203_v53 = vsel %vm175_vm3, %v801_v51, 0.0 }
 0x206   :  { %648 = vpow2.f32 %v196_v52  ;;  %204 = vadd.xlane.f32.xlu1 %v203_v53 }
 0x209   :  { %v187_v57 = vpop.xlane.xlu1 %186 }
 0x20a   :  { %v191_v59 = vsub.f32 %v173_v38, %v187_v57 }
 0x20c   :  { %v805_v54 = vpop.eup %648  ;;  %v198_v61 = vmul.f32 1.442695, %v191_v59 }
 0x20d   :  { %v206_v55 = vsel %vm175_vm3, %v805_v54, 0.0 }
 0x20e   :  { %207 = vadd.xlane.f32.xlu0 %v206_v55  ;;  %650 = vpow2.f32 %v198_v61 }
 0x214   :  { %v364_v56 = vpop.permute.xlu0 %363  ;;  %v818_v63 = vpop.eup %650 }
 0x215   :  { %621 = vmatmul.msk.f32.gmra.mxu0 %vm135_vm1, %v364_v56  ;;  %v209_v0 = vsel %vm175_vm3, %v818_v63, 0.0 }
 0x216   :  { %272 = vrot.lane.b32.xlu2 %v758_v6, %s707_s29 }
 0x21f   :  { %365 = vrot.lane.b32.xlu1 %v767_v7, %s704_s28 }
 0x23f   :  { %409 = vmax.xlane.f32.xlu2 %v408_v62 }
 0x249   :  { %210 = vadd.xlane.f32.xlu1 %v209_v0 }
 0x271   :  { %v202_v1 = vpop.xlane.xlu2 %201 }
 0x272   :  { %652 = vrcp.f32 %v202_v1  ;;  %v223_v9 = vand.u32 2147483648, %v202_v1  ;;  %v221_v10 = vand.u32 2147483647, %v202_v1  ;;  %vm217_vm8 = vweird.f32 %v202_v1 }
 0x274   :  { %v224_v15 = vor.u32 1.1754944e-38, %v223_v9  ;;  %vm222_vm10 = vcmp.eq.f32.partialorder %v221_v10, 8.507059e+37 }
 0x278   :  { %v653_v2 = vpop.eup %652 }
 0x279   :  { %v213_v3 = vmul.f32 %v653_v2, %v202_v1  ;;  %v205_v4 = vpop.xlane.xlu1 %204  ;;  %v273_v5 = vpop.permute.xlu2 %272  ;;  %vm218_vm7 = vweird.f32 %v653_v2 }
 0x27a   :  { %654 = vrcp.f32 %v205_v4  ;;  %302 = vmatpush.msra.mxu2 %v273_v5  ;;  %vm219_vm9 = vmor %vm217_vm8, %vm218_vm7  ;;  %v237_v22 = vand.u32 2147483648, %v205_v4  ;;  %vm231_vm12 = vweird.f32 %v205_v4 }
 0x27b   :  { %v214_v6 = vsub.f32 1.0, %v213_v3 }
 0x27c   :  { %v238_v28 = vor.u32 1.1754944e-38, %v237_v22  ;;  %v120_v22 = vld [vmem:[%s917_s2 + $0x18] sm:$0xff] }
 0x27d   :  { %v215_v8 = vmul.f32 %v653_v2, %v214_v6 }
 0x27f   :  { %v399_v11 = vpop.f32.mrf.mxu0  ;;  %v216_v12 = vadd.f32 %v653_v2, %v215_v8 }
 0x280   :  { %v655_v13 = vpop.eup %654  ;;  %v823_v14 = vadd.f32 %v399_v11, %v780_v25  ;;  %v235_v25 = vand.u32 2147483647, %v205_v4 }
 0x281   :  { %v227_v16 = vmul.f32 %v655_v13, %v205_v4  ;;  %v208_v17 = vpop.xlane.xlu0 %207  ;;  %v220_v18 = vsel %vm219_vm9, %v653_v2, %v216_v12  ;;  %vm232_vm11 = vweird.f32 %v655_v13 }
 0x282   :  { %656 = vrcp.f32 %v208_v17  ;;  %v411_v19 = vsel %vm175_vm3, %v823_v14, -inf  ;;  %v225_v21 = vsel %vm222_vm10, %v224_v15, %v220_v18  ;;  %vm233_vm13 = vmor %vm231_vm12, %vm232_vm11  ;;  %vm236_vm14 = vcmp.eq.f32.partialorder %v235_v25, 8.507059e+37  ;;  %v123_v18 = vld [vmem:[%s917_s2 + $0x30] sm:$0xff]  ;;  %v118_v25 = vld [vmem:[%s917_s2 + $0x8] sm:$0xff] }
 0x283   :  { %v228_v20 = vsub.f32 1.0, %v227_v16  ;;  %412 = vmax.xlane.f32.xlu0 %v411_v19  ;;  %v268_v23 = vmul.f32 %v796_v45, %v225_v21  ;;  %v251_v35 = vand.u32 2147483648, %v208_v17  ;;  %v249_v38 = vand.u32 2147483647, %v208_v17  ;;  %v122_v19 = vld [vmem:[%s917_s2 + $0x28] sm:$0xff] }
 0x284   :  { %vm245_vm2 = vweird.f32 %v208_v17  ;;  %vm330_vm11 = vcmask 392192   ;;  %vm335_vm12 = vcmask 523264  }
 0x285   :  { %v229_v24 = vmul.f32 %v655_v13, %v228_v20  ;;  %613 = vmatmul.msk.f32.vlgmr.msra.gmra.mxu2 %vm175_vm3, %v268_v23  ;;  %v252_v40 = vor.u32 1.1754944e-38, %v251_v35  ;;  %vm250_vm5 = vcmp.eq.f32.partialorder %v249_v38, 8.507059e+37  ;;  %v119_v23 = vld [vmem:[%s917_s2 + $0x10] sm:$0xff] }
 0x287   :  { %v230_v26 = vadd.f32 %v655_v13, %v229_v24 }
 0x288   :  { %v657_v27 = vpop.eup %656 }
 0x289   :  { %v241_v29 = vmul.f32 %v657_v27, %v208_v17  ;;  %v234_v30 = vsel %vm233_vm13, %v655_v13, %v230_v26  ;;  %vm246_vm15 = vweird.f32 %v657_v27  ;;  %v124_v17 = vld [vmem:[%s917_s2 + $0x38] sm:$0xff]  ;;  %v117_v26 = vld [vmem:[%s917_s2] sm:$0xff] }
 0x28a   :  { %v239_v32 = vsel %vm236_vm14, %v238_v28, %v234_v30  ;;  %vm247_vm4 = vmor %vm245_vm2, %vm246_vm15  ;;  %347 = vmatpush.msra.mxu3 %v124_v17  ;;  %574 = vmatpush.msrb.mxu2 %v124_v17 }
 0x28b   :  { %v242_v33 = vsub.f32 1.0, %v241_v29  ;;  %v269_v34 = vmul.f32 %v801_v51, %v239_v32 }
 0x28c   :  { %348 = vmatpush.msra.mxu3 %v123_v18  ;;  %575 = vmatpush.msrb.mxu2 %v123_v18 }
 0x28d   :  { %v243_v37 = vmul.f32 %v657_v27, %v242_v33  ;;  %614 = vmatmul.msk.f32.gmra.mxu2 %vm175_vm3, %v269_v34 }
 0x28e   :  { %349 = vmatpush.msra.mxu3 %v122_v19  ;;  %576 = vmatpush.msrb.mxu2 %v122_v19 }
 0x28f   :  { %v244_v39 = vadd.f32 %v657_v27, %v243_v37 }
 0x291   :  { %v366_v41 = vpop.permute.xlu1 %365  ;;  %v248_v42 = vsel %vm247_vm4, %v657_v27, %v244_v39 }
 0x292   :  { %v402_v43 = vpop.f32.mrf.mxu0  ;;  %622 = vmatmul.msk.f32.gmra.mxu0 %vm135_vm1, %v366_v41  ;;  %v253_v44 = vsel %vm250_vm5, %v252_v40, %v248_v42 }
 0x293   :  { %v403_v45 = vadd.f32 %v402_v43, %v784_v31  ;;  %v270_v46 = vmul.f32 %v805_v54, %v253_v44 }
 0x295   :  { %v414_v47 = vsel %vm175_vm3, %v403_v45, -inf  ;;  %615 = vmatmul.msk.f32.gmra.mxu2 %vm175_vm3, %v270_v46 }
 0x296   :  { %415 = vmax.xlane.f32.xlu0 %v414_v47 }
 0x2b2   :  { %v410_v48 = vpop.xlane.xlu2 %409 }
 0x2b3   :  { %v420_v49 = vsub.f32 %v814_v60, %v410_v48 }
 0x2b5   :  { %v424_v50 = vmul.f32 1.442695, %v420_v49 }
 0x2b7   :  { %658 = vpow2.f32 %v424_v50 }
 0x2bc   :  { %v211_v51 = vpop.xlane.xlu1 %210 }
 0x2bd   :  { %v837_v52 = vpop.eup %658  ;;  %660 = vrcp.f32 %v211_v51  ;;  %v265_v56 = vand.u32 2147483648, %v211_v51  ;;  %v263_v58 = vand.u32 2147483647, %v211_v51  ;;  %vm259_vm7 = vweird.f32 %v211_v51 }
 0x2be   :  { %v432_v53 = vsel %vm175_vm3, %v837_v52, 0.0 }
 0x2bf   :  { %433 = vadd.xlane.f32.xlu0 %v432_v53  ;;  %v266_v60 = vor.u32 1.1754944e-38, %v265_v56  ;;  %vm264_vm9 = vcmp.eq.f32.partialorder %v263_v58, 8.507059e+37 }
 0x2c3   :  { %v661_v31 = vpop.eup %660 }
 0x2c4   :  { %v255_v54 = vmul.f32 %v661_v31, %v211_v51  ;;  %vm260_vm6 = vweird.f32 %v661_v31 }
 0x2c5   :  { %vm261_vm8 = vmor %vm259_vm7, %vm260_vm6 }
 0x2c6   :  { %v256_v55 = vsub.f32 1.0, %v255_v54 }
 0x2c8   :  { %v257_v57 = vmul.f32 %v661_v31, %v256_v55 }
 0x2ca   :  { %v258_v59 = vadd.f32 %v661_v31, %v257_v57 }
 0x2cc   :  { %v262_v61 = vsel %vm261_vm8, %v661_v31, %v258_v59 }
 0x2cd   :  { %v267_v62 = vsel %vm264_vm9, %v266_v60, %v262_v61 }
 0x2ce   :  { %v271_v0 = vmul.f32 %v818_v63, %v267_v62 }
 0x2d0   :  { %616 = vmatmul.msk.f32.gmra.mxu2 %vm175_vm3, %v271_v0 }
 0x2f6   :  { %v413_v1 = vpop.xlane.xlu0 %412 }
 0x2f7   :  { %v421_v2 = vsub.f32 %v823_v14, %v413_v1 }
 0x2f9   :  { %v426_v4 = vmul.f32 1.442695, %v421_v2 }
 0x2fb   :  { %662 = vpow2.f32 %v426_v4 }
 0x301   :  { %v849_v63 = vpop.eup %662 }
 0x302   :  { %v435_v10 = vsel %vm175_vm3, %v849_v63, 0.0 }
 0x308   :  { %v844_v3 = vpop.f32.mrf.mxu2 }
 0x309   :  { %v416_v11 = vpop.xlane.xlu0 %415 }
 0x30a   :  { %v422_v12 = vsub.f32 %v403_v45, %v416_v11 }
 0x30c   :  { %v428_v13 = vmul.f32 1.442695, %v422_v12 }
 0x30e   :  { %664 = vpow2.f32 %v428_v13 }
 0x30f   :  { %v405_v5 = vpop.f32.mrf.mxu0 }
 0x310   :  { %v406_v6 = vadd.f32 %v405_v5, %v788_v36  ;;  %v307_v8 = vpop.f32.mrf.mxu2 }
 0x311   :  { %317 = vrot.lane.b32.xlu0 %v307_v8, %s708_s30 }
 0x312   :  { %v417_v9 = vsel %vm175_vm3, %v406_v6, -inf }
 0x313   :  { %418 = vmax.xlane.f32.xlu1 %v417_v9 }
 0x314   :  { %v854_v36 = vpop.eup %664 }
 0x315   :  { %v438_v15 = vsel %vm175_vm3, %v854_v36, 0.0 }
 0x318   :  { %v310_v14 = vpop.f32.mrf.mxu2 }
 0x31b   :  { %436 = vadd.xlane.f32.xlu1 %v435_v10 }
 0x332   :  { %v434_v29 = vpop.xlane.xlu0 %433 }
 0x333   :  { %v455_v43 = vand.u32 2147483648, %v434_v29  ;;  %vm449_vm13 = vweird.f32 %v434_v29  ;;  %v453_v45 = vand.u32 2147483647, %v434_v29 }
 0x334   :  { %321 = vrot.lane.b32.xlu1 %v310_v14, %s709_s5 }
 0x335   :  { %v456_v31 = vor.u32 1.1754944e-38, %v455_v43  ;;  %vm454_vm15 = vcmp.eq.f32.partialorder %v453_v45, 8.507059e+37 }
 0x33b   :  { %439 = vadd.xlane.f32.xlu0 %v438_v15 }
 0x33c   :  { %504 = vrot.lane.b32.xlu1 %v767_v7, %s707_s29  ;;  %v121_v7 = vld [vmem:[%s917_s2 + $0x20] sm:$0xff] }
 0x33d   :  { %350 = vmatpush.msra.mxu3 %v121_v7  ;;  %577 = vmatpush.msrb.mxu2 %v121_v7 }
 0x33f   :  { %351 = vmatpush.msra.mxu3 %v120_v22  ;;  %578 = vmatpush.msrb.mxu2 %v120_v22 }
 0x341   :  { %352 = vmatpush.msra.mxu3 %v119_v23  ;;  %579 = vmatpush.msrb.mxu2 %v119_v23 }
 0x343   :  { %353 = vmatpush.msra.mxu3 %v118_v25  ;;  %580 = vmatpush.msrb.mxu2 %v118_v25 }
 0x345   :  { %354 = vmatpush.msra.mxu3 %v117_v26  ;;  %581 = vmatpush.msrb.mxu2 %v117_v26 }
 0x353   :  { %v313_v16 = vpop.f32.mrf.mxu2 }
 0x354   :  { %325 = vrot.lane.b32.xlu2 %v313_v16, %s707_s29 }
 0x383   :  { %v318_v38 = vpop.permute.xlu0 %317 }
 0x384   :  { %v328_v44 = vsel %vm135_vm1, %v844_v3, %v318_v38 }
 0x386   :  { %v419_v20 = vpop.xlane.xlu1 %418 }
 0x387   :  { %v423_v21 = vsub.f32 %v406_v6, %v419_v20  ;;  %v643_v20 = vld [vmem:[%s918_s3] ss:$0 sm:$0xff]  ;;  %s710_s3 = smov [#allocation2]  }
 0x388   :  { %s592_s23 = sshll.u32 %s710_s3, 4  ;;  %s593_s23 = int_to_ptr.vmem [resolvable:$true] %s592_s23 }
 0x389   :  { %v430_v24 = vmul.f32 1.442695, %v423_v21 }
 0x38b   :  { %666 = vpow2.f32 %v430_v24 }
 0x38c   :  { %668 = vrcp.f32 %v434_v29 }
 0x38e   :  { %v437_v30 = vpop.xlane.xlu1 %436 }
 0x38f   :  { %670 = vrcp.f32 %v437_v30  ;;  %v469_v56 = vand.u32 2147483648, %v437_v30  ;;  %vm463_vm4 = vweird.f32 %v437_v30  ;;  %v467_v59 = vand.u32 2147483647, %v437_v30 }
 0x391   :  { %v885_v27 = vpop.eup %666  ;;  %v470_v62 = vor.u32 1.1754944e-38, %v469_v56  ;;  %vm468_vm6 = vcmp.eq.f32.partialorder %v467_v59, 8.507059e+37 }
 0x392   :  { %v441_v28 = vsel %vm175_vm3, %v885_v27, 0.0  ;;  %v669_v32 = vpop.eup %668 }
 0x393   :  { %442 = vadd.xlane.f32.xlu2 %v441_v28  ;;  %v445_v33 = vmul.f32 %v669_v32, %v434_v29  ;;  %vm450_vm10 = vweird.f32 %v669_v32 }
 0x394   :  { %vm451_vm14 = vmor %vm449_vm13, %vm450_vm10 }
 0x395   :  { %v446_v34 = vsub.f32 1.0, %v445_v33  ;;  %v671_v35 = vpop.eup %670 }
 0x396   :  { %v459_v40 = vmul.f32 %v671_v35, %v437_v30  ;;  %vm464_vm2 = vweird.f32 %v671_v35 }
 0x397   :  { %v447_v39 = vmul.f32 %v669_v32, %v446_v34  ;;  %vm465_vm5 = vmor %vm463_vm4, %vm464_vm2 }
 0x398   :  { %v460_v42 = vsub.f32 1.0, %v459_v40 }
 0x399   :  { %v448_v41 = vadd.f32 %v669_v32, %v447_v39 }
 0x39a   :  { %v461_v51 = vmul.f32 %v671_v35, %v460_v42 }
 0x39b   :  { %v452_v53 = vsel %vm451_vm14, %v669_v32, %v448_v41 }
 0x39c   :  { %v457_v54 = vsel %vm454_vm15, %v456_v31, %v452_v53  ;;  %v462_v55 = vadd.f32 %v671_v35, %v461_v51 }
 0x39d   :  { %v500_v58 = vmul.f32 %v837_v52, %v457_v54 }
 0x39e   :  { %v466_v61 = vsel %vm465_vm5, %v671_v35, %v462_v55 }
 0x39f   :  { %v471_v2 = vsel %vm468_vm6, %v470_v62, %v466_v61 }
 0x3a0   :  { %v501_v6 = vmul.f32 %v849_v63, %v471_v2 }
 0x3a6   :  { %v322_v37 = vpop.permute.xlu1 %321 }
 0x3a7   :  { %v329_v46 = vsel %vm24_vm0, %v328_v44, %v322_v37 }
 0x3ae   :  { %v505_v47 = vpop.permute.xlu1 %504  ;;  %v326_v48 = vpop.permute.xlu2 %325 }
 0x3af   :  { %v440_v49 = vpop.xlane.xlu0 %439  ;;  %534 = vmatpush.msrb.mxu3 %v505_v47  ;;  %v331_v50 = vsel %vm330_vm11, %v329_v46, %v326_v48 }
 0x3b0   :  { %672 = vrcp.f32 %v440_v49  ;;  %617 = vmatmul.msk.f32.vlgmr.msra.gmra.mxu3 %vm335_vm12, %v331_v50  ;;  %v483_v4 = vand.u32 2147483648, %v440_v49  ;;  %vm477_vm8 = vweird.f32 %v440_v49  ;;  %v481_v5 = vand.u32 2147483647, %v440_v49 }
 0x3b2   :  { %v484_v8 = vor.u32 1.1754944e-38, %v483_v4  ;;  %vm482_vm10 = vcmp.eq.f32.partialorder %v481_v5, 8.507059e+37 }
 0x3b6   :  { %v673_v57 = vpop.eup %672 }
 0x3b7   :  { %v473_v60 = vmul.f32 %v673_v57, %v440_v49  ;;  %vm478_vm7 = vweird.f32 %v673_v57 }
 0x3b8   :  { %623 = vmatmul.msk.f32.vlgmr.msrb.gmra.mxu3 %vm175_vm3, %v500_v58  ;;  %vm479_vm9 = vmor %vm477_vm8, %vm478_vm7 }
 0x3b9   :  { %v474_v0 = vsub.f32 1.0, %v473_v60 }
 0x3bb   :  { %v475_v1 = vmul.f32 %v673_v57, %v474_v0 }
 0x3bd   :  { %v476_v3 = vadd.f32 %v673_v57, %v475_v1 }
 0x3bf   :  { %v480_v52 = vsel %vm479_vm9, %v673_v57, %v476_v3 }
 0x3c0   :  { %624 = vmatmul.msk.f32.gmra.mxu3 %vm175_vm3, %v501_v6  ;;  %v485_v9 = vsel %vm482_vm10, %v484_v8, %v480_v52 }
 0x3c1   :  { %v502_v10 = vmul.f32 %v854_v36, %v485_v9 }
 0x3c8   :  { %625 = vmatmul.msk.f32.gmra.mxu3 %vm175_vm3, %v502_v10 }
 0x406   :  { %v443_v11 = vpop.xlane.xlu2 %442 }
 0x407   :  { %674 = vrcp.f32 %v443_v11  ;;  %v497_v15 = vand.u32 2147483648, %v443_v11  ;;  %v495_v63 = vand.u32 2147483647, %v443_v11  ;;  %vm491_vm14 = vweird.f32 %v443_v11 }
 0x409   :  { %v498_v18 = vor.u32 1.1754944e-38, %v497_v15  ;;  %vm496_vm2 = vcmp.eq.f32.partialorder %v495_v63, 8.507059e+37 }
 0x40d   :  { %v675_v12 = vpop.eup %674 }
 0x40e   :  { %v487_v13 = vmul.f32 %v675_v12, %v443_v11  ;;  %vm492_vm13 = vweird.f32 %v675_v12 }
 0x40f   :  { %vm493_vm15 = vmor %vm491_vm14, %vm492_vm13 }
 0x410   :  { %v488_v14 = vsub.f32 1.0, %v487_v13 }
 0x412   :  { %v489_v16 = vmul.f32 %v675_v12, %v488_v14 }
 0x414   :  { %v490_v17 = vadd.f32 %v675_v12, %v489_v16 }
 0x416   :  { %v494_v19 = vsel %vm493_vm15, %v675_v12, %v490_v17 }
 0x417   :  { %v499_v7 = vsel %vm496_vm2, %v498_v18, %v494_v19 }
 0x418   :  { %v503_v36 = vmul.f32 %v885_v27, %v499_v7 }
 0x41a   :  { %626 = vmatmul.msk.f32.gmra.mxu3 %vm175_vm3, %v503_v36 }
 0x433   :  { %v356_v21 = vpop.f32.mrf.mxu3 }
 0x434   :  { %v357_v22 = vadd.f32 %v643_v20, %v356_v21 }
 0x436   :  { %359 = vst [vmem:[#allocation2] sm:$0xff] %v357_v22 }
 0x43b   :  { %v536_v23 = vpop.f32.mrf.mxu3 }
 0x443   :  { %v539_v24 = vpop.f32.mrf.mxu3 }
 0x444   :  { %549 = vrot.lane.b32.xlu1 %v539_v24, %s708_s30 }
 0x44b   :  { %v542_v25 = vpop.f32.mrf.mxu3 }
 0x44c   :  { %553 = vrot.lane.b32.xlu1 %v542_v25, %s709_s5 }
 0x49d   :  { %v545_v26 = vpop.f32.mrf.mxu3 }
 0x49e   :  { %557 = vrot.lane.b32.xlu1 %v545_v26, %s707_s29 }
 0x4b6   :  { %v550_v27 = vpop.permute.xlu1 %549 }
 0x4b7   :  { %v560_v29 = vsel %vm135_vm1, %v536_v23, %v550_v27 }
 0x4be   :  { %v554_v28 = vpop.permute.xlu1 %553 }
 0x4bf   :  { %v561_v30 = vsel %vm24_vm0, %v560_v29, %v554_v28 }
 0x510   :  { %v558_v32 = vpop.permute.xlu1 %557 }
 0x511   :  { %v562_v33 = vsel %vm330_vm11, %v561_v30, %v558_v32 }
 0x512   :  { %627 = vmatmul.msk.f32.vlgmr.msrb.gmra.mxu2 %vm335_vm12, %v562_v33 }
 0x595   :  { %v583_v34 = vpop.f32.mrf.mxu2 }
 0x596   :  { %v584_v35 = vadd.f32 %v643_v20, %v583_v34 }
 0x598   :  { %587 = vst [vmem:[#allocation2 + $0x8] sm:$0xff] %v584_v35 }
 0x599   :  { %600 = dma.vmem_to_hbm [thread:$0]  %s593_s23, 256, %s595_s26, [#allocation3], %s711_s1, %s711_s1, %s712_s27  }
 0x59a   :  { %700 = dma.done.wait [#allocation3], 256  }
 0x59b   :  { %701 = vsyncadd [#allocation3], 4294967040 }
 0x59c   :  { %605 = vsyncpa [#allocation3], 1 }

</bundles_post_ra>
